<compile_context>
chip_gen: v7x
topology: tpu7x:2x2x1
jax: 0.10.0
libtpu: 0.0.40
codegen_flags: <defaults>
</compile_context>

<pallas_src>
import functools

import jax
import jax.numpy as jnp
from jax import lax
from jax.experimental import pallas as pl
from jax.experimental.pallas import tpu as pltpu

_LANE = 128
_SUB = 8


def _cdiv(a, b):
    return -(-a // b)


def _round_up(v, m):
    return ((v + m - 1) // m) * m


def _default_num_shards():
    """2 grid shards only on chips with 2 TensorCores per JAX device
    (v4/v5p megacore, v7x); 1 on single-TC chips (v2/v3/v5e/v6e)."""
    try:
        kind = jax.devices()[0].device_kind.lower()
    except Exception:
        return 1
    single_tc = ("v2", "v3", "v5 lite", "v5e", "v5lite", "v6 lite", "v6e",
                 "v6lite")
    if any(tag in kind for tag in single_tc):
        return 1
    return 2


# ---------------------------------------------------------------------------
# Streaming "sum over all elements of elementwise(x, t)" kernel.
# Output: one resident (8,128) vreg-shaped partial-sum block per shard.
# ---------------------------------------------------------------------------
def _mean_sum_kernel(x_ref, t_ref, o_ref, *, elementwise, tile_rows,
                     inner_steps, last_block, rows_in_last):
    p = pl.program_id(0)   # shard axis ("parallel": both TCs on megacore/v7x)
    i = pl.program_id(1)   # streaming/reduction axis ("arbitrary")
    step = p * inner_steps + i

    # Output block index depends only on p, so this (8,128) block stays
    # resident in VMEM across the inner axis and acts as the accumulator.
    @pl.when(i == 0)
    def _():
        o_ref[...] = jnp.zeros_like(o_ref)

    x = x_ref[...].astype(jnp.float32)
    t = t_ref[...].astype(jnp.float32)
    loss = elementwise(x, t)

    def _fold(v):
        # Pure-VALU fold of the tile onto one (8,128) vreg; no cross-lane work.
        return v.reshape(tile_rows // _SUB, _SUB, _LANE).sum(axis=0)

    # Fast path: fully valid interior blocks — no iota / compare / select.
    @pl.when(step < last_block)
    def _():
        o_ref[...] += _fold(loss)

    # Tail path: the single (possibly ragged) last block, plus any duplicate
    # steps whose index_map was clamped onto it (those contribute zero).
    @pl.when(step >= last_block)
    def _():
        row = lax.broadcasted_iota(jnp.int32, (tile_rows, _LANE), 0)
        bound = jnp.where(step == last_block, rows_in_last, 0)
        o_ref[...] += _fold(jnp.where(row < bound, loss, 0.0))


def _masked_mean(elementwise, x_flat, t_flat, n_total, *,
                 tile_rows_target=8192, num_shards=None):
    """mean(elementwise(x, t)) over all n_total flat elements."""
    if num_shards is None:
        num_shards = _default_num_shards()

    rows_valid = n_total // _LANE          # number of full 128-lane rows
    n_main = rows_valid * _LANE
    n_tail = n_total - n_main              # < 128 ragged flat elements

    total = jnp.zeros((), jnp.float32)
    if n_tail:
        # Sub-lane tail: cheaper in plain JAX than padding the whole stream.
        xt = x_flat[n_main:].astype(jnp.float32)
        tt = t_flat[n_main:].astype(jnp.float32)
        total = total + jnp.sum(elementwise(xt, tt))

    if rows_valid == 0:
        return total / n_total

    x2 = (x_flat[:n_main] if n_tail else x_flat).reshape(rows_valid, _LANE)
    t2 = (t_flat[:n_main] if n_tail else t_flat).reshape(rows_valid, _LANE)

    num_shards = max(1, min(num_shards, _cdiv(rows_valid, _SUB)))
    rows_per_shard = _cdiv(rows_valid, num_shards)
    tile_rows = min(_round_up(tile_rows_target, _SUB),
                    _round_up(rows_per_shard, _SUB))
    tile_rows = max(_SUB, tile_rows)
    nt = _cdiv(rows_valid, tile_rows)      # number of real row-blocks
    inner_steps = _cdiv(nt, num_shards)
    last_block = nt - 1
    rows_in_last = rows_valid - last_block * tile_rows

    kernel = functools.partial(
        _mean_sum_kernel, elementwise=elementwise, tile_rows=tile_rows,
        inner_steps=inner_steps, last_block=last_block,
        rows_in_last=rows_in_last)

    def in_map(p, i):
        # Clamp onto the last real block: re-reading one block is free and
        # lets ragged sizes run without any wrapper-side padding copies.
        return (jnp.minimum(p * inner_steps + i, last_block), 0)

    # TODO(synk): if the DMA is still exposed on v7x with bf16 inputs, add
    # pipeline_mode=pl.Buffered(3) to the two input BlockSpecs and sweep 2 vs 3.
    out = pl.pallas_call(
        kernel,
        out_shape=jax.ShapeDtypeStruct((num_shards * _SUB, _LANE),
                                       jnp.float32),
        grid_spec=pltpu.PrefetchScalarGridSpec(
            num_scalar_prefetch=0,
            grid=(num_shards, inner_steps),
            in_specs=[
                pl.BlockSpec((tile_rows, _LANE), in_map),
                pl.BlockSpec((tile_rows, _LANE), in_map),
            ],
            out_specs=pl.BlockSpec((_SUB, _LANE), lambda p, i: (p, 0)),
        ),
        compiler_params=pltpu.CompilerParams(
            dimension_semantics=("parallel", "arbitrary"),
            vmem_limit_bytes=32 * 1024 * 1024),
    )(x2, t2)

    # One tiny cross-lane reduction + mean normalization in the wrapper.
    return (total + jnp.sum(out)) / n_total


# ---------------------------------------------------------------------------
# FocalLoss2
# ---------------------------------------------------------------------------
def _focal_elementwise(gamma, alpha):
    gamma = float(gamma)
    alpha = float(alpha)
    a_pos = -alpha
    a_neg = -(1.0 - alpha)

    def fn(x, t):
        one_m_x = 1.0 - x
        log_x = jnp.log(x)          # no eps clamp: faithful to torch source
        log_1mx = jnp.log(one_m_x)
        if gamma == 2.0:
            pow_1mx = one_m_x * one_m_x
            pow_x = x * x
        elif gamma == int(gamma) and 0 <= int(gamma) <= 4:
            pow_1mx = jnp.ones_like(x)
            pow_x = jnp.ones_like(x)
            for _ in range(int(gamma)):
                pow_1mx = pow_1mx * one_m_x
                pow_x = pow_x * x
        else:
            # Non-integer gamma: reuse the logs we already need (2 EUP exps).
            pow_1mx = jnp.exp(gamma * log_1mx)
            pow_x = jnp.exp(gamma * log_x)
        return (a_pos * pow_1mx) * (t * log_x) \
            + (a_neg * pow_x) * ((1.0 - t) * log_1mx)

    return fn


def focal_loss2(inp, target, gamma=2.0, alpha=0.25, *,
                tile_rows_target=8192, num_shards=None):
    """Mean focal loss; inp/target are same-shape probability arrays."""
    assert inp.shape == target.shape
    n_total = int(inp.size)
    return _masked_mean(_focal_elementwise(gamma, alpha),
                        inp.reshape(-1), target.reshape(-1), n_total,
                        tile_rows_target=tile_rows_target,
                        num_shards=num_shards)


# ---------------------------------------------------------------------------
# All_loss.forward — single fused kernel (BCE + feature-magnitude term).
# The inputs are tiny, so one call with whole-array VMEM blocks avoids all
# wrapper-side concatenate / transpose / reshape traffic and extra launches.
# ---------------------------------------------------------------------------
def _all_loss_kernel(sn_ref, sa_ref, nl_ref, al_ref, fn_ref, fa_ref, o_ref,
                     *, alpha, margin, inv_t, inv_ns, inv_b):
    sn = sn_ref[...].astype(jnp.float32)   # (Bn,1) probabilities
    sa = sa_ref[...].astype(jnp.float32)   # (Ba,1)
    nl = nl_ref[...].astype(jnp.float32)   # (Bn,1) labels
    al = al_ref[...].astype(jnp.float32)   # (Ba,1)

    def bce(x, t):                         # torch.nn.BCELoss clamps at -100
        log_x = jnp.maximum(jnp.log(x), -100.0)
        log_1mx = jnp.maximum(jnp.log(1.0 - x), -100.0)
        return -(t * log_x + (1.0 - t) * log_1mx)

    loss_cls = (jnp.sum(bce(sn, nl)) + jnp.sum(bce(sa, al))) * inv_ns

    fn = fn_ref[...].astype(jnp.float32)   # (B,T,F), kept in native layout
    fa = fa_ref[...].astype(jnp.float32)
    mean_n = jnp.sum(fn, axis=1) * inv_t   # time-mean: sublane/XLU reduce
    mean_a = jnp.sum(fa, axis=1) * inv_t
    nrm_n = jnp.sqrt(jnp.sum(mean_n * mean_n, axis=-1, keepdims=True))  # (B,1)
    nrm_a = jnp.sqrt(jnp.sum(mean_a * mean_a, axis=-1, keepdims=True))
    s = jnp.abs(margin - nrm_a) + nrm_n
    loss_um = jnp.sum(s * s) * inv_b

    o_ref[0, 0] = loss_cls + alpha * loss_um


def all_loss(score_normal, score_abnormal, nlabel, alabel, feat_n, feat_a,
             viz=None, *, alpha, margin):
    # torch.cat + squeeze + .cuda() are pure layout/placement glue; the unused
    # `viz` argument is ignored.
    del viz
    sn = score_normal.reshape(-1, 1)
    sa = score_abnormal.reshape(-1, 1)
    nl = nlabel.reshape(-1, 1).astype(sn.dtype)
    al = alabel.reshape(-1, 1).astype(sa.dtype)
    n_scores = sn.shape[0] + sa.shape[0]
    B, T, _ = feat_n.shape

    kernel = functools.partial(
        _all_loss_kernel, alpha=float(alpha), margin=float(margin),
        inv_t=1.0 / T, inv_ns=1.0 / n_scores, inv_b=1.0 / B)

    out = pl.pallas_call(
        kernel,
        out_shape=jax.ShapeDtypeStruct((1, 1), jnp.float32),
        in_specs=[pl.BlockSpec(memory_space=pltpu.MemorySpace.VMEM)] * 6,
        out_specs=pl.BlockSpec(memory_space=pltpu.MemorySpace.SMEM),
    )(sn, sa, nl, al, feat_n, feat_a)
    return out[0, 0]


if __name__ == "__main__":
    key = jax.random.PRNGKey(0)
    ks = jax.random.split(key, 8)
    eps = 1e-3

    # ---- FocalLoss2, lane-aligned size (2*4*16*16 = 2048 elements) ----
    B, C, H, W = 2, 4, 16, 16
    x = jax.random.uniform(ks[0], (B, C, H, W), jnp.float32,
                           minval=eps, maxval=1.0 - eps)
    t = jax.random.uniform(ks[1], (B, C, H, W), jnp.float32)
    fl = jax.block_until_ready(focal_loss2(x, t, gamma=2.0, alpha=0.25))
    fl_ref = jnp.mean(-0.25 * (1 - x) ** 2 * (t * jnp.log(x))
                      - 0.75 * x ** 2 * ((1 - t) * jnp.log(1 - x)))
    assert jnp.allclose(fl, fl_ref, rtol=1e-5, atol=1e-6), (fl, fl_ref)

    # ---- FocalLoss2, ragged size (3*5*7*11 = 1155: ragged rows + tail) ----
    xr = jax.random.uniform(ks[2], (3, 5, 7, 11), jnp.float32,
                            minval=eps, maxval=1.0 - eps)
    tr = jax.random.uniform(ks[3], (3, 5, 7, 11), jnp.float32)
    flr = jax.block_until_ready(focal_loss2(xr, tr, gamma=2.0, alpha=0.25))
    flr_ref = jnp.mean(-0.25 * (1 - xr) ** 2 * (tr * jnp.log(xr))
                       - 0.75 * xr ** 2 * ((1 - tr) * jnp.log(1 - xr)))
    assert jnp.allclose(flr, flr_ref, rtol=1e-5, atol=1e-6), (flr, flr_ref)

    # ---- All_loss forward (single fused kernel) ----
    Bs, T, F = 2, 8, 32
    alpha_w, margin = 0.0001, 100.0
    score_normal = jax.random.uniform(ks[4], (Bs, 1), jnp.float32,
                                      minval=eps, maxval=1.0 - eps)
    score_abnormal = jax.random.uniform(ks[5], (Bs, 1), jnp.float32,
                                        minval=eps, maxval=1.0 - eps)
    nlabel = jnp.zeros((Bs,), jnp.float32)
    alabel = jnp.ones((Bs,), jnp.float32)
    feat_n = jax.random.normal(ks[6], (Bs, T, F), jnp.float32)
    feat_a = jax.random.normal(ks[7], (Bs, T, F), jnp.float32)

    total = jax.block_until_ready(
        all_loss(score_normal, score_abnormal, nlabel, alabel, feat_n, feat_a,
                 alpha=alpha_w, margin=margin))

    # pure-JAX reference
    score = jnp.concatenate([score_normal, score_abnormal], 0).reshape(-1)
    label = jnp.concatenate([nlabel, alabel], 0)
    loss_cls_ref = jnp.mean(-(label * jnp.maximum(jnp.log(score), -100.0)
                              + (1 - label) * jnp.maximum(jnp.log(1 - score),
                                                          -100.0)))
    nrm_a = jnp.linalg.norm(jnp.mean(feat_a, axis=1), axis=1)
    nrm_n = jnp.linalg.norm(jnp.mean(feat_n, axis=1), axis=1)
    loss_um_ref = jnp.mean((jnp.abs(margin - nrm_a) + nrm_n) ** 2)
    total_ref = loss_cls_ref + alpha_w * loss_um_ref
    assert jnp.allclose(total, total_ref, rtol=1e-4, atol=1e-5), (total, total_ref)

    print("KERNEL_OK")
</pallas_src>

<mosaic_0001>
module attributes {stable_mosaic.version = 11 : i64} {
  func.func @_mean_sum_kernel(%arg0: i32, %arg1: i32, %arg2: memref<8x128xf32, #tpu.memory_space<vmem>>, %arg3: memref<8x128xf32, #tpu.memory_space<vmem>>, %arg4: memref<8x128xf32, #tpu.memory_space<vmem>>) attributes {dimension_semantics = [#tpu.dimension_semantics<parallel>, #tpu.dimension_semantics<arbitrary>], iteration_bounds = array<i64: 2, 1>, scalar_prefetch = 0 : i64, scratch_operands = 0 : i64, tpu.core_type = #tpu.core_type<tc>, window_params = [{transform_indices = @transform_0, window_bounds = array<i64: 8, 128>}, {transform_indices = @transform_1, window_bounds = array<i64: 8, 128>}, {transform_indices = @transform_2, window_bounds = array<i64: 8, 128>}]} {
    %c1_i32 = arith.constant 1 : i32
    %0 = arith.muli %arg0, %c1_i32 : i32
    %1 = arith.addi %0, %arg1 : i32
    %c0_i32 = arith.constant 0 : i32
    %2 = arith.cmpi eq, %arg1, %c0_i32 : i32
    %3 = arith.extui %2 : i1 to i32
    %c0_i32_0 = arith.constant 0 : i32
    %4 = arith.cmpi ne, %3, %c0_i32_0 : i32
    scf.if %4 {
      %cst_11 = arith.constant 0.000000e+00 : f32
      %30 = vector.broadcast %cst_11 : f32 to vector<8x128xf32>
      %c0_12 = arith.constant 0 : index
      %c0_13 = arith.constant 0 : index
      %31 = vector.load %arg4[%c0_12, %c0_13] : memref<8x128xf32, #tpu.memory_space<vmem>>, vector<8x128xf32>
      tpu.vector_store %arg4[%c0_12, %c0_13], %30 {strides = array<i32>} : memref<8x128xf32, #tpu.memory_space<vmem>>, vector<8x128xf32>,
    } else {
    }
    %c0 = arith.constant 0 : index
    %c0_1 = arith.constant 0 : index
    %5 = vector.load %arg2[%c0, %c0_1] : memref<8x128xf32, #tpu.memory_space<vmem>>, vector<8x128xf32>
    %c0_2 = arith.constant 0 : index
    %c0_3 = arith.constant 0 : index
    %6 = vector.load %arg3[%c0_2, %c0_3] : memref<8x128xf32, #tpu.memory_space<vmem>>, vector<8x128xf32>
    %cst = arith.constant 1.000000e+00 : f32
    %7 = vector.broadcast %cst : f32 to vector<8x128xf32>
    %8 = arith.subf %7, %5 : vector<8x128xf32>
    %9 = math.log %5 : vector<8x128xf32>
    %10 = math.log %8 : vector<8x128xf32>
    %11 = arith.mulf %8, %8 : vector<8x128xf32>
    %12 = arith.mulf %5, %5 : vector<8x128xf32>
    %cst_4 = arith.constant -2.500000e-01 : f32
    %13 = vector.broadcast %cst_4 : f32 to vector<8x128xf32>
    %14 = arith.mulf %13, %11 : vector<8x128xf32>
    %15 = arith.mulf %6, %9 : vector<8x128xf32>
    %16 = arith.mulf %14, %15 : vector<8x128xf32>
    %cst_5 = arith.constant -7.500000e-01 : f32
    %17 = vector.broadcast %cst_5 : f32 to vector<8x128xf32>
    %18 = arith.mulf %17, %12 : vector<8x128xf32>
    %cst_6 = arith.constant 1.000000e+00 : f32
    %19 = vector.broadcast %cst_6 : f32 to vector<8x128xf32>
    %20 = arith.subf %19, %6 : vector<8x128xf32>
    %21 = arith.mulf %20, %10 : vector<8x128xf32>
    %22 = arith.mulf %18, %21 : vector<8x128xf32>
    %23 = arith.addf %16, %22 : vector<8x128xf32>
    %c1_i32_7 = arith.constant 1 : i32
    %24 = arith.cmpi slt, %1, %c1_i32_7 : i32
    %25 = arith.extui %24 : i1 to i32
    %c0_i32_8 = arith.constant 0 : i32
    %26 = arith.cmpi ne, %25, %c0_i32_8 : i32
    scf.if %26 {
      %c0_11 = arith.constant 0 : index
      %c0_12 = arith.constant 0 : index
      %30 = vector.load %arg4[%c0_11, %c0_12] : memref<8x128xf32, #tpu.memory_space<vmem>>, vector<8x128xf32>
      %31 = vector.shape_cast %23 : vector<8x128xf32> to vector<1x8x128xf32>
      %cst_13 = arith.constant dense<0.000000e+00> : vector<8x128xf32>
      %32 = vector.multi_reduction <add>, %31, %cst_13 [0] : vector<1x8x128xf32> to vector<8x128xf32>
      %33 = arith.addf %30, %32 : vector<8x128xf32>
      %c0_14 = arith.constant 0 : index
      %c0_15 = arith.constant 0 : index
      %34 = vector.load %arg4[%c0_14, %c0_15] : memref<8x128xf32, #tpu.memory_space<vmem>>, vector<8x128xf32>
      tpu.vector_store %arg4[%c0_14, %c0_15], %33 {strides = array<i32>} : memref<8x128xf32, #tpu.memory_space<vmem>>, vector<8x128xf32>,
    } else {
    }
    %c1_i32_9 = arith.constant 1 : i32
    %27 = arith.cmpi sge, %1, %c1_i32_9 : i32
    %28 = arith.extui %27 : i1 to i32
    %c0_i32_10 = arith.constant 0 : i32
    %29 = arith.cmpi ne, %28, %c0_i32_10 : i32
    scf.if %29 {
      %30 = tpu.iota {dimensions = array<i32: 0>} : vector<8x128xi32>
      %c1_i32_11 = arith.constant 1 : i32
      %31 = arith.cmpi eq, %1, %c1_i32_11 : i32
      %c8_i32 = arith.constant 8 : i32
      %c0_i32_12 = arith.constant 0 : i32
      %32 = arith.select %31, %c8_i32, %c0_i32_12 : i32
      %c0_13 = arith.constant 0 : index
      %c0_14 = arith.constant 0 : index
      %33 = vector.load %arg4[%c0_13, %c0_14] : memref<8x128xf32, #tpu.memory_space<vmem>>, vector<8x128xf32>
      %34 = vector.broadcast %32 : i32 to vector<8x128xi32>
      %35 = arith.cmpi slt, %30, %34 : vector<8x128xi32>
      %cst_15 = arith.constant 0.000000e+00 : f32
      %36 = vector.broadcast %cst_15 : f32 to vector<8x128xf32>
      %37 = arith.select %35, %23, %36 : vector<8x128xi1>, vector<8x128xf32>
      %38 = vector.shape_cast %37 : vector<8x128xf32> to vector<1x8x128xf32>
      %cst_16 = arith.constant dense<0.000000e+00> : vector<8x128xf32>
      %39 = vector.multi_reduction <add>, %38, %cst_16 [0] : vector<1x8x128xf32> to vector<8x128xf32>
      %40 = arith.addf %33, %39 : vector<8x128xf32>
      %c0_17 = arith.constant 0 : index
      %c0_18 = arith.constant 0 : index
      %41 = vector.load %arg4[%c0_17, %c0_18] : memref<8x128xf32, #tpu.memory_space<vmem>>, vector<8x128xf32>
      tpu.vector_store %arg4[%c0_17, %c0_18], %40 {strides = array<i32>} : memref<8x128xf32, #tpu.memory_space<vmem>>, vector<8x128xf32>,
    } else {
    }
    return
  }
  func.func @transform_0(%arg0: i32, %arg1: i32) -> (i32, i32) {
    %c1_i32 = arith.constant 1 : i32
    %0 = arith.muli %arg0, %c1_i32 : i32
    %1 = arith.addi %0, %arg1 : i32
    %c1_i32_0 = arith.constant 1 : i32
    %2 = arith.minsi %1, %c1_i32_0 : i32
    %c0_i32 = arith.constant 0 : i32
    %c0_i32_1 = arith.constant 0 : i32
    return %2, %c0_i32 : i32, i32
  }
  func.func @transform_1(%arg0: i32, %arg1: i32) -> (i32, i32) {
    %c1_i32 = arith.constant 1 : i32
    %0 = arith.muli %arg0, %c1_i32 : i32
    %1 = arith.addi %0, %arg1 : i32
    %c1_i32_0 = arith.constant 1 : i32
    %2 = arith.minsi %1, %c1_i32_0 : i32
    %c0_i32 = arith.constant 0 : i32
    %c0_i32_1 = arith.constant 0 : i32
    return %2, %c0_i32 : i32, i32
  }
  func.func @transform_2(%arg0: i32, %arg1: i32) -> (i32, i32) {
    %c0_i32 = arith.constant 0 : i32
    %c0_i32_0 = arith.constant 0 : i32
    return %arg0, %c0_i32 : i32, i32
  }
}

</mosaic_0001>

<bundles_post_ra>
// kernel: tpu_custom_call.1
= control target key start
LH: loop header
LB: loop body
LE: loop exit
PB: predicated region body
PF: predicated region fallthrough
CT: control target
= control target key end

     0   :  { %7 = vsyncpa [#allocation3], 0  ;;  %s958_s0 = inlined_call_operand.hbm [shape: f32[16,128], index: 0, kind: input, shape index: {}]   ;;  %s959_s1 = inlined_call_operand.hbm [shape: f32[16,128], index: 1, kind: input, shape index: {}]   ;;  %s960_s2 = inlined_call_operand.hbm [shape: f32[16,128], index: 2, kind: output, shape index: {}]  }
   0x1   :  { %9 = vsyncpa [#allocation3 + $0x1], 0 }
   0x2   :  { %10 = vsyncpa [#allocation6], 0 }
   0x3   :  { %12 = vsyncpa [#allocation6 + $0x1], 0 }
   0x4   :  { %13 = vsyncpa [#allocation4], 0 }
   0x5   :  { %15 = vsyncpa [#allocation4 + $0x1], 0  ;;  %s698_s9 = smov 0   ;;  %s700_s10 = smov 0  }
   0x6   :  { %s702_s11 = smov 0   ;;  %s704_s12 = smov 0  }
   0x7   :  { %s706_s13 = smov 0   ;;  %s708_s14 = smov 0  }
   0x8   :  { %s710_s15 = smov 0   ;;  %s712_s16 = smov 0  }
   0x9   :  { %s714_s17 = smov 0  }
   0xa LB: > { %s393_s18 = sadd.s32 4294967295, %s677_s17   ;;  %s394_s19 = sadd.s32 4294967294, %s677_s17   ;;  %s677_s17 = sphi %s714_s17, %s21_s17   ;;  %s673_s16 = sphi %s712_s16, %s985_s16   ;;  %s669_s15 = sphi %s710_s15, %s984_s15   ;;  %s665_s14 = sphi %s708_s14, %s983_s14   ;;  %s661_s13 = sphi %s706_s13, %s982_s13   ;;  %s657_s12 = sphi %s704_s12, %s981_s12   ;;  %s653_s11 = sphi %s702_s11, %s980_s11   ;;  %s649_s10 = sphi %s700_s10, %s979_s10   ;;  %s645_s9 = sphi %s698_s9, %s978_s9  }
   0xb   : > { %s33_s20 = sadd.s32 1, %s673_s16  ;;  %p38_p0 = scmp.lt.s32.totalorder %s673_s16, 1 }
   0xc   : > { %p35_p1 = scmp.ge.s32.totalorder %s33_s20, 2  ;;  %s46_s21 = sadd.s32 1, %s665_s14 }
   0xd   : > { %s747_s22 = scalar_select %p38_p0, %s673_s16, 1 }
   0xe   : > { %s987_s20 = smov (%p35_p1, %s33_s20), 0  ;;  %p53_p2 = scmp.ne.s32.totalorder %s665_s14, %s661_s13 }
   0xf   : > { %p54_p3 = scmp.eq.s32.totalorder %s677_s17, 0  ;;  %p41_p4 = scmp.lt.s32.totalorder %s987_s20, 1 }
  0x10   : > { %p59_p5 = scmp.ne.s32.totalorder %s661_s13, %s657_s12  ;;  %p60_p7 = scmp.eq.s32.totalorder %s393_s18, 0 }
  0x11   : > { %p756_p6 = por %p54_p3, %p53_p2  ;;  %s101_s26 = ssub.s32 %s673_s16, %s987_s20 }
  0x12   : > { %s42_s24 = scalar_select %p41_p4, %s987_s20, 1 }
  0x13   : > { %p761_p8 = por %p60_p7, %p59_p5  ;;  %p102_p9 = scmp.eq.s32.totalorder %s101_s26, 0 }
  0x14   : > { %s43_s27 = ssub.s32 %s747_s22, %s42_s24  ;;  %s104_s28 = sadd.s32 1, %s653_s11 }
  0x15   : > { %s965_s25 = scalar_select %p761_p8, 1, 0 }
  0x16   : > { %p44_p10 = scmp.eq.s32.totalorder %s43_s27, 0  ;;  %p114_p11 = scmp.ne.s32.totalorder %s653_s11, %s649_s10 }
  0x17   : > { %s770_s29 = scalar_select %p102_p9, %s653_s11, %s104_s28  }
  0x18   : > { %s773_s30 = scalar_select %p44_p10, %s665_s14, %s46_s21  }
  0x19   : > { %p115_p12 = scmp.eq.s32.totalorder %s393_s18, 1  ;;  %p120_p13 = scmp.ne.s32.totalorder %s649_s10, %s645_s9 }
  0x1a   : > { %p121_p0 = scmp.eq.s32.totalorder %s394_s19, 1  ;;  %p428_p4 = scmp.lt.s32.totalorder %s677_s17, 2 }
  0x1b   : > { %p779_p1 = por %p115_p12, %p114_p11  ;;  %s790_s5 = sand.u32 1, %s665_s14  }
  0x1c   : > { %p784_p3 = por %p121_p0, %p120_p13  ;;  %s398_s6 = sshll.u32 %s747_s22, 7 }
  0x1d   : > { %s966_s3 = scalar_select %p779_p1, 1, 0 }
  0x1e   : > { %s967_s4 = scalar_select %p784_p3, 1, 0 }
  0x1f   : > { %s961_s7 = sshll.u32 %s790_s5, 3  ;;  %s799_s18 = scalar_lea.hbm %s958_s0, %s398_s6 }
  0x20   : > { %s145_s19 = scalar_lea.vmem [#allocation2], %s961_s7  ;;  %p805_p5 = pnand %p428_p4, %p756_p6 }
  0x21   : > { %s155_s21 = sshll.u32 %s145_s19, 4  ;;  %s142_s26 = scalar_lea.sflag [#allocation3], %s790_s5  ;;  %s809_s21 = int_to_ptr.vmem [resolvable:$true] %s155_s21 }
  0x22   : > { %s507_s27 = scalar_lea.hbm %s799_s18, 128  ;;  %p509_p11 = pneg %p805_p5 }
  0x23   : > { %p508_p10 = scmp.ne.s32.totalorder %s799_s18, %s507_s27  ;;  %s512_s8 = scalar_lea.hbm %s958_s0, 256 }
  0x24   : > { %p513_p6 = scmp.lt.u32.totalorder %s799_s18, %s958_s0  ;;  %p514_p0 = scmp.lt.u32.totalorder %s512_s8, %s507_s27 }
  0x25   : > { %p510_p12 = pnand %p509_p11, %p508_p10  ;;  %p516_p2 = scmp.lt.u32.totalorder %s507_s27, %s799_s18 }
  0x26   : > { %p515_p4 = por %p514_p0, %p513_p6 }
  0x27   : > { %p511_p13 = pneg %p510_p12 }
  0x28   : > { %p517_p7 = por %p516_p2, %p515_p4 }
  0x2a   : > { %p518_p9 = pnand %p517_p7, %p511_p13 }
  0x2c   : > { %521 = shalt.err (!%p518_p9)
}
  0x2d   : > { %s522_s7 = scalar_lea.vmem %s809_s21, 128  ;;  %s679_s23 = smov [#allocation2]  }
  0x2e   : > { %p523_p10 = scmp.ne.s32.totalorder %s809_s21, %s522_s7  ;;  %s527_s28 = sshll.u32 %s679_s23, 4  ;;  %s528_s28 = int_to_ptr.vmem [resolvable:$false] %s527_s28 }
  0x2f   : > { %s529_s12 = scalar_lea.vmem %s528_s28, 256  ;;  %p530_p1 = scmp.lt.s32.totalorder %s809_s21, %s528_s28 }
  0x30   : > { %p525_p12 = pnand %p523_p10, %p509_p11  ;;  %p531_p6 = scmp.lt.s32.totalorder %s529_s12, %s522_s7 }
  0x32   : > { %p526_p3 = pneg %p525_p12  ;;  %p532_p0 = por %p531_p6, %p530_p1 }
  0x34   : > { %p533_p2 = pnand %p532_p0, %p526_p3 }
  0x36   : > { %536 = shalt.err (!%p533_p2)
}
  0x37   : > { %420 = dma.hbm_to_vmem [thread:$0]  (!%p805_p5), %s799_s18, 128, %s809_s21, %s142_s26  }
  0x38   : > { %p969_p7 = scmp.lt.s32.totalorder %s677_s17, 3  ;;  %p970_p9 = scmp.ge.s32.totalorder %s677_s17, 1 }
  0x39   : > { %s852_s19 = scalar_lea.hbm %s959_s1, %s398_s6  ;;  %s972_s23 = sshll.u32 %s790_s5, 3 }
  0x3a   : > { %p843_p13 = pnand %p970_p9, %p969_p7  ;;  %s166_s28 = scalar_lea.vmem [#allocation5], %s972_s23 }
  0x3b   : > { %s176_s12 = sshll.u32 %s166_s28, 4  ;;  %s163_s18 = scalar_lea.sflag [#allocation6], %s790_s5  ;;  %s177_s12 = int_to_ptr.vmem [resolvable:$true] %s176_s12 }
  0x3c   : > { %s971_s27 = scalar_select %p843_p13, 1, 0 }
  0x3d   : > { %s537_s21 = scalar_lea.hbm %s852_s19, 128  ;;  %s542_s6 = scalar_lea.hbm %s959_s1, 256 }
  0x3e   : > { %p538_p1 = scmp.ne.s32.totalorder %s852_s19, %s537_s21  ;;  %p543_p10 = scmp.lt.u32.totalorder %s852_s19, %s959_s1 }
  0x3f   : > { %p544_p12 = scmp.lt.u32.totalorder %s542_s6, %s537_s21  ;;  %p546_p0 = scmp.lt.u32.totalorder %s537_s21, %s852_s19 }
  0x40   : > { %p540_p3 = pnand %p538_p1, %p509_p11 }
  0x41   : > { %p545_p6 = por %p544_p12, %p543_p10 }
  0x42   : > { %p541_p4 = pneg %p540_p3 }
  0x43   : > { %p547_p2 = por %p546_p0, %p545_p6 }
  0x45   : > { %p548_p7 = pnand %p547_p2, %p541_p4 }
  0x47   : > { %551 = shalt.err (!%p548_p7)
}
  0x48   : > { %s552_s5 = scalar_lea.vmem %s177_s12, 128  ;;  %s680_s23 = smov [#allocation5]  }
  0x49   : > { %p553_p9 = scmp.ne.s32.totalorder %s177_s12, %s552_s5  ;;  %s557_s28 = sshll.u32 %s680_s23, 4  ;;  %s558_s28 = int_to_ptr.vmem [resolvable:$false] %s557_s28 }
  0x4a   : > { %s559_s22 = scalar_lea.vmem %s558_s28, 256  ;;  %p560_p8 = scmp.lt.s32.totalorder %s177_s12, %s558_s28 }
  0x4b   : > { %p555_p1 = pnand %p553_p9, %p509_p11  ;;  %p561_p13 = scmp.lt.s32.totalorder %s559_s22, %s552_s5 }
  0x4d   : > { %p556_p3 = pneg %p555_p1  ;;  %p562_p10 = por %p561_p13, %p560_p8 }
  0x4f   : > { %p563_p12 = pnand %p562_p10, %p556_p3 }
  0x51   : > { %566 = shalt.err (!%p563_p12)
}
  0x52   : > { %423 = dma.hbm_to_vmem [thread:$0]  (!%p805_p5), %s852_s19, 128, %s177_s12, %s163_s18  }
  0x53   : > { %p973_p4 = scmp.ne.s32.totalorder %s971_s27, 0 }
  0x54   : > { %s187_s21 = sand.u32 (!%p973_p4), 1, %s661_s13   ;;  %p974_p11 = scmp.ne.s32.totalorder (!%p973_p4), %s965_s25, 0 }
  0x55   : > { %185 = sbr.rel (%p973_p4) target bundleno = 162 (0xa2), region = 28  ;;  %s402_s26 = sshll.u32 (!%p973_p4), %s187_s21, 3 }
  0x56   : > { %s188_s6 = scalar_lea.sflag (!%p973_p4), [#allocation3], %s187_s21  ;;  %s191_s7 = scalar_lea.vmem (!%p973_p4), [#allocation2], %s402_s26 }
  0x5c   : > { %632 = dma.done.wait (%p974_p11), %s188_s6, 128  }
  0x5d   : > { %634 = vsyncadd (%p974_p11), %s188_s6, 4294967168  ;;  %s197_s8 = scalar_lea.sflag [#allocation6], %s187_s21  ;;  %s200_s5 = scalar_lea.vmem [#allocation5], %s402_s26 }
  0x5e   : > { %636 = dma.done.wait (%p974_p11), %s197_s8, 128  }
  0x5f   : > { %638 = vsyncadd (%p974_p11), %s197_s8, 4294967168  ;;  %s223_s24 = sand.u32 1, %s649_s10   ;;  %v681_v0 = vmov 0.0   ;;  %v238_v1 = vld [vmem:[%s191_s7] sm:$0xff]  ;;  %v239_v4 = vld [vmem:[%s200_s5] sm:$0xff]  ;;  %p405_p8 = scmp.ge.s32.totalorder %s669_s15, 1 }
  0x60   : > { %s404_s27 = sshll.u32 %s223_s24, 3  ;;  %v240_v2 = vsub.f32 1.0, %v238_v1  ;;  %503 = vlog2.f32 %v238_v1  ;;  %v246_v5 = vmul.f32 %v238_v1, %v238_v1  ;;  %v251_v9 = vsub.f32 1.0, %v239_v4 }
  0x61   : > { %s890_s19 = scalar_lea.vmem [#allocation7], %s404_s27 }
  0x62   : > { %237 = vst [vmem:[%s890_s19] sm:$0xff] %v681_v0  ;;  %505 = vlog2.f32 %v240_v2  ;;  %v245_v3 = vmul.f32 %v240_v2, %v240_v2  ;;  %v250_v13 = vmul.f32 -0.75, %v246_v5 }
  0x64   : > { %v247_v8 = vmul.f32 -0.25, %v245_v3 }
  0x69   : > { %v259_v18 = vld [vmem:[%s890_s19] sm:$0xff] (!%p405_p8) }
  0x6a   : > { %v504_v6 = vpop.eup %503 }
  0x6b   : > { %v242_v7 = vmul.f32 0.6931472, %v504_v6 }
  0x6c   : > { %v506_v10 = vpop.eup %505 }
  0x6d   : > { %v244_v11 = vmul.f32 0.6931472, %v506_v10  ;;  %v248_v12 = vmul.f32 %v242_v7, %v239_v4  ;;  %258 = sbr.rel (%p405_p8) target bundleno = 120 (0x78), region = 44 }
  0x6f   : > { %v249_v14 = vmul.f32 %v248_v12, %v247_v8  ;;  %v252_v15 = vmul.f32 %v251_v9, %v244_v11 }
  0x71   : > { %v253_v16 = vmul.f32 %v252_v15, %v250_v13 }
  0x73   : > { %v254_v17 = vadd.f32 %v253_v16, %v249_v14 }
  0x75   : > { %v261_v19 = vadd.f32 %v259_v18, %v254_v17 }
  0x77   : > { %262 = vst [vmem:[%s890_s19] sm:$0xff] %v261_v19 }
  0x78 PF: > { %p406_p5 = scmp.lt.s32.totalorder %s669_s15, 1 }
  0x79   : > { %v267_v20 = vlaneseq (!%p406_p5)  ;;  %p269_p13 = scmp.eq.s32.totalorder (!%p406_p5), %s669_s15, 1 }
  0x7a   : > { %266 = sbr.rel (%p406_p5) target bundleno = 137 (0x89), region = 48 }
  0x7b   : > { %v268_v21 = vshrl.u32 (!%p406_p5), %v267_v20, 7 }
  0x7e   : > { %v271_v22 = vld [vmem:[%s890_s19] sm:$0xff] (!%p406_p5) }
  0x81   : > { %s270_s25 = scalar_select %p269_p13, 8, 0 }
  0x83   : > { %v272_v23 = vstv %s270_s25 }
  0x84   : > { %vm273_vm0 = vcmp.lt.s32.totalorder %v268_v21, %v272_v23 }
  0x85   : > { %v274_v24 = vsel %vm273_vm0, %v254_v17, 0.0 }
  0x86   : > { %v276_v25 = vadd.f32 %v274_v24, %v271_v22 }
  0x88   : > { %277 = vst [vmem:[%s890_s19] sm:$0xff] %v276_v25 }
  0x89 PF: > { %s408_s12 = sshll.u32 %s669_s15, 7  ;;  %s292_s22 = sshll.u32 %s890_s19, 4  ;;  %s293_s22 = int_to_ptr.vmem [resolvable:$true] %s292_s22 }
  0x8a   : > { %s904_s28 = scalar_lea.hbm %s960_s2, %s408_s12  ;;  %s279_s21 = scalar_lea.sflag [#allocation4], %s223_s24 }
  0x8b   : > { %s567_s26 = scalar_lea.vmem %s293_s22, 128  ;;  %p975_p0 = scmp.ne.s32.totalorder %s966_s3, 0 }
  0x8c   : > { %p568_p6 = scmp.ne.s32.totalorder %s293_s22, %s567_s26  ;;  %s682_s6 = smov [#allocation7]  }
  0x8d   : > { %s571_s7 = sshll.u32 %s682_s6, 4  ;;  %s572_s7 = int_to_ptr.vmem [resolvable:$false] %s571_s7 }
  0x8e   : > { %p569_p2 = pnand %p568_p6, %p975_p0  ;;  %s573_s8 = scalar_lea.vmem %s572_s7, 256 }
  0x8f   : > { %p574_p9 = scmp.lt.s32.totalorder %s293_s22, %s572_s7  ;;  %p575_p1 = scmp.lt.s32.totalorder %s573_s8, %s567_s26 }
  0x90   : > { %p570_p7 = pneg %p569_p2 }
  0x91   : > { %p576_p3 = por %p575_p1, %p574_p9 }
  0x93   : > { %p577_p10 = pnand %p576_p3, %p570_p7 }
  0x95   : > { %580 = shalt.err (!%p577_p10)
}
  0x96   : > { %s581_s15 = scalar_lea.hbm %s904_s28, 128  ;;  %s585_s27 = scalar_lea.hbm %s960_s2, 256 }
  0x97   : > { %p582_p12 = scmp.ne.s32.totalorder %s904_s28, %s581_s15  ;;  %p586_p8 = scmp.lt.u32.totalorder %s904_s28, %s960_s2 }
  0x98   : > { %p587_p5 = scmp.lt.u32.totalorder %s585_s27, %s581_s15  ;;  %p589_p6 = scmp.lt.u32.totalorder %s581_s15, %s904_s28 }
  0x99   : > { %p583_p4 = pnand %p582_p12, %p975_p0 }
  0x9a   : > { %p588_p13 = por %p587_p5, %p586_p8 }
  0x9b   : > { %p584_p11 = pneg %p583_p4 }
  0x9c   : > { %p590_p2 = por %p589_p6, %p588_p13 }
  0x9e   : > { %p591_p7 = pnand %p590_p2, %p584_p11 }
  0xa0   : > { %594 = shalt.err (!%p591_p7)
}
  0xa1   : > { %415 = dma.vmem_to_hbm [thread:$0]  (%p975_p0), %s293_s22, 128, %s904_s28, %s279_s21  }
  0xa2 PF: > { %s304_s12 = sand.u32 1, %s645_s9   ;;  %p976_p9 = scmp.ne.s32.totalorder %s967_s4, 0 }
  0xa3   : > { %p977_p1 = scmp.ge.s32.totalorder %s677_s17, 2  ;;  %s305_s18 = scalar_lea.sflag [#allocation4], %s304_s12 }
  0xa5   : > { %p425_p3 = pnand %p977_p1, %p976_p9 }
  0xa7   : > { %640 = dma.done.wait (!%p425_p3), %s305_s18, 128  }
  0xa8   : > { %642 = vsyncadd (!%p425_p3), %s305_s18, 4294967168  ;;  %s21_s17 = sadd.s32 1, %s677_s17   ;;  %s978_s9 = smov %s649_s10 }
  0xa9   : > { %p18_p10 = scmp.ge.s32.totalorder %s21_s17, 4   ;;  %s979_s10 = smov %s653_s11 }
  0xaa   : > { %s980_s11 = smov %s770_s29  ;;  %s981_s12 = smov %s661_s13 }
  0xab   : > { %s982_s13 = smov %s665_s14  ;;  %s983_s14 = smov %s773_s30 }
  0xac   : > { %s984_s15 = smov %s673_s16  ;;  %s985_s16 = smov %s987_s20 }
  0xad   :  { %20 = sbr.rel (!%p18_p10) target bundleno = 10 (0xa), region = 98 }
  0xb4   :  { %310 = vsyncpa [#allocation3], 1 }
  0xb5   :  { %312 = vsyncpa [#allocation3 + $0x1], 1 }
  0xb6   :  { %313 = vsyncpa [#allocation6], 1 }
  0xb7   :  { %315 = vsyncpa [#allocation6 + $0x1], 1 }
  0xb8   :  { %316 = vsyncpa [#allocation4], 1 }
  0xb9   :  { %318 = vsyncpa [#allocation4 + $0x1], 1 }

</bundles_post_ra>
